<compile_context>
chip_gen: v7x
topology: tpu7x:2x2x1
jax: 0.10.0
libtpu: 0.0.40
codegen_flags: <defaults>
</compile_context>

<pallas_src>
import functools

import jax
import jax.numpy as jnp
from jax.experimental import pallas as pl
from jax.experimental.pallas import tpu as pltpu

LANE = 128
MAX_BLOCK_ROWS = 1024            # 1024 x 128 x f32 = 512 KiB per input block
_VMEM_LIMIT = 32 * 1024 * 1024   # safe scoped-VMEM budget on v5e / v6e / v7x


def _bce_block_lane_sums(x_ref, t_ref, valid_rows):
    """Per-lane partial sums of the clamped BCE term for one block. Returns (1, 128)."""
    block_rows = x_ref.shape[0]
    x = x_ref[...].astype(jnp.float32)
    t = t_ref[...].astype(jnp.float32)
    log_x = jnp.maximum(jnp.log(x), -100.0)          # PyTorch clamps log at -100
    log_1mx = jnp.maximum(jnp.log(1.0 - x), -100.0)
    # -(t*log(x) + (1-t)*log(1-x)) factored to save one VPU multiply per element.
    term = -(log_1mx + t * (log_x - log_1mx))
    # Mask rows past the end of the (possibly ragged) last block: OOB rows contain
    # unspecified data and must contribute exactly 0 to the sum.
    row_ids = (jax.lax.broadcasted_iota(jnp.int32, (block_rows, LANE), 0)
               + pl.program_id(0) * block_rows)
    term = jnp.where(row_ids < valid_rows, term, 0.0)
    return jnp.sum(term, axis=0, keepdims=True)      # (1, 128)


def _bce2_kernel(xf_ref, tf_ref, xr_ref, tr_ref, out_ref, *, valid_rows):
    pf = _bce_block_lane_sums(xf_ref, tf_ref, valid_rows)
    pr = _bce_block_lane_sums(xr_ref, tr_ref, valid_rows)
    out_ref[...] = jnp.concatenate([pf, pr], axis=0)[None]          # (1, 2, 128)


def _bce1_kernel(x_ref, t_ref, out_ref, *, valid_rows):
    out_ref[...] = _bce_block_lane_sums(x_ref, t_ref, valid_rows)[None]  # (1, 1, 128)


def _to_lanes(x):
    """Flatten to (rows, 128) in the original dtype; only pads the sub-128 tail."""
    flat = x.reshape(-1)
    n = flat.shape[0]
    rem = n % LANE
    if rem:
        # Zero padding contributes exactly 0 to the clamped BCE sum.
        flat = jnp.pad(flat, (0, LANE - rem))
    return flat.reshape(-1, LANE), n


def _grid_params(rows):
    block_rows = rows if rows <= MAX_BLOCK_ROWS else MAX_BLOCK_ROWS
    num_blocks = pl.cdiv(rows, block_rows)
    return block_rows, num_blocks


def _compiler_params():
    return pltpu.CompilerParams(
        dimension_semantics=("parallel",),
        vmem_limit_bytes=_VMEM_LIMIT,
    )


def _bce_sum_pair(x, t):
    """Sum of elementwise BCE for one (probs, targets) pair. Returns (sum, count)."""
    x2, n = _to_lanes(x)
    t2, _ = _to_lanes(t)
    rows = x2.shape[0]
    block_rows, num_blocks = _grid_params(rows)
    partials = pl.pallas_call(
        functools.partial(_bce1_kernel, valid_rows=rows),
        out_shape=jax.ShapeDtypeStruct((num_blocks, 1, LANE), jnp.float32),
        grid_spec=pltpu.PrefetchScalarGridSpec(
            num_scalar_prefetch=0,
            grid=(num_blocks,),
            in_specs=[pl.BlockSpec((block_rows, LANE), lambda i: (i, 0))] * 2,
            out_specs=pl.BlockSpec((1, 1, LANE), lambda i: (i, 0, 0)),
        ),
        compiler_params=_compiler_params(),
    )(x2, t2)
    return jnp.sum(partials), n


def _bce_sum_fused(xf, tf, xr, tr):
    """Fused sums for (fake, real) pairs of identical shape. Returns (sum_f, sum_r, n)."""
    xf2, n = _to_lanes(xf)
    tf2, _ = _to_lanes(tf)
    xr2, _ = _to_lanes(xr)
    tr2, _ = _to_lanes(tr)
    rows = xf2.shape[0]
    block_rows, num_blocks = _grid_params(rows)
    partials = pl.pallas_call(
        functools.partial(_bce2_kernel, valid_rows=rows),
        out_shape=jax.ShapeDtypeStruct((num_blocks, 2, LANE), jnp.float32),
        grid_spec=pltpu.PrefetchScalarGridSpec(
            num_scalar_prefetch=0,
            grid=(num_blocks,),
            in_specs=[pl.BlockSpec((block_rows, LANE), lambda i: (i, 0))] * 4,
            out_specs=pl.BlockSpec((1, 2, LANE), lambda i: (i, 0, 0)),
        ),
        compiler_params=_compiler_params(),
    )(xf2, tf2, xr2, tr2)
    sums = jnp.sum(partials, axis=(0, 2))   # (2,) -> [sum_fake, sum_real]
    return sums[0], sums[1], n


@jax.jit
def bce_loss_2d(outputs_fake, outputs_real, targets_fake, targets_real):
    """Pallas equivalent of BCELoss2D.forward:
       mean_BCE(outputs_fake, targets_fake) + mean_BCE(outputs_real, targets_real)."""
    if outputs_fake.shape == outputs_real.shape:
        sum_f, sum_r, n = _bce_sum_fused(
            outputs_fake, targets_fake, outputs_real, targets_real)
        return (sum_f + sum_r) / jnp.float32(n)
    # Fallback for differently-shaped fake/real maps: two streaming launches.
    sum_f, n_f = _bce_sum_pair(outputs_fake, targets_fake)
    sum_r, n_r = _bce_sum_pair(outputs_real, targets_real)
    return sum_f / jnp.float32(n_f) + sum_r / jnp.float32(n_r)


def _bce_mean_ref(x, t):
    x = x.astype(jnp.float32)
    t = t.astype(jnp.float32)
    lx = jnp.maximum(jnp.log(x), -100.0)
    l1 = jnp.maximum(jnp.log(1.0 - x), -100.0)
    return jnp.mean(-(t * lx + (1.0 - t) * l1))


if __name__ == "__main__":
    key = jax.random.PRNGKey(0)
    k1, k2, k3, k4 = jax.random.split(key, 4)

    shape = (2, 4, 16, 16)  # NCHW
    # Discriminator-style outputs: probabilities in (0, 1).
    outputs_fake = jax.nn.sigmoid(jax.random.normal(k1, shape, jnp.float32))
    outputs_real = jax.nn.sigmoid(jax.random.normal(k2, shape, jnp.float32))
    # Targets in [0, 1] (typically zeros / ones for a GAN; soft targets here).
    targets_fake = jax.random.uniform(k3, shape, jnp.float32)
    targets_real = jax.random.uniform(k4, shape, jnp.float32)

    loss = bce_loss_2d(outputs_fake, outputs_real, targets_fake, targets_real)
    loss = jax.block_until_ready(loss)

    ref = _bce_mean_ref(outputs_fake, targets_fake) + _bce_mean_ref(
        outputs_real, targets_real
    )
    assert jnp.allclose(loss, ref, rtol=1e-5, atol=1e-5), (loss, ref)

    print("KERNEL_OK")
</pallas_src>

<mosaic_0001>
module attributes {stable_mosaic.version = 11 : i64} {
  func.func @_bce2_kernel(%arg0: i32, %arg1: memref<16x128xf32, #tpu.memory_space<vmem>>, %arg2: memref<16x128xf32, #tpu.memory_space<vmem>>, %arg3: memref<16x128xf32, #tpu.memory_space<vmem>>, %arg4: memref<16x128xf32, #tpu.memory_space<vmem>>, %arg5: memref<1x2x128xf32, #tpu.memory_space<vmem>>) attributes {dimension_semantics = [#tpu.dimension_semantics<parallel>], iteration_bounds = array<i64: 1>, scalar_prefetch = 0 : i64, scratch_operands = 0 : i64, tpu.core_type = #tpu.core_type<tc>, window_params = [{transform_indices = @transform_0, window_bounds = array<i64: 16, 128>}, {transform_indices = @transform_1, window_bounds = array<i64: 16, 128>}, {transform_indices = @transform_2, window_bounds = array<i64: 16, 128>}, {transform_indices = @transform_3, window_bounds = array<i64: 16, 128>}, {transform_indices = @transform_4, window_bounds = array<i64: 1, 2, 128>}]} {
    %c0 = arith.constant 0 : index
    %c0_0 = arith.constant 0 : index
    %0 = vector.load %arg1[%c0, %c0_0] : memref<16x128xf32, #tpu.memory_space<vmem>>, vector<16x128xf32>
    %c0_1 = arith.constant 0 : index
    %c0_2 = arith.constant 0 : index
    %1 = vector.load %arg2[%c0_1, %c0_2] : memref<16x128xf32, #tpu.memory_space<vmem>>, vector<16x128xf32>
    %2 = math.log %0 : vector<16x128xf32>
    %cst = arith.constant -1.000000e+02 : f32
    %3 = vector.broadcast %cst : f32 to vector<16x128xf32>
    %4 = arith.maximumf %2, %3 : vector<16x128xf32>
    %cst_3 = arith.constant 1.000000e+00 : f32
    %5 = vector.broadcast %cst_3 : f32 to vector<16x128xf32>
    %6 = arith.subf %5, %0 : vector<16x128xf32>
    %7 = math.log %6 : vector<16x128xf32>
    %cst_4 = arith.constant -1.000000e+02 : f32
    %8 = vector.broadcast %cst_4 : f32 to vector<16x128xf32>
    %9 = arith.maximumf %7, %8 : vector<16x128xf32>
    %10 = arith.subf %4, %9 : vector<16x128xf32>
    %11 = arith.mulf %1, %10 : vector<16x128xf32>
    %12 = arith.addf %9, %11 : vector<16x128xf32>
    %cst_5 = arith.constant 0.000000e+00 : f32
    %13 = vector.broadcast %cst_5 : f32 to vector<16x128xf32>
    %14 = arith.subf %13, %12 : vector<16x128xf32>
    %15 = tpu.iota {dimensions = array<i32: 0>} : vector<16x128xi32>
    %c16_i32 = arith.constant 16 : i32
    %16 = arith.muli %arg0, %c16_i32 : i32
    %17 = vector.broadcast %16 : i32 to vector<16x128xi32>
    %18 = arith.addi %15, %17 : vector<16x128xi32>
    %c16_i32_6 = arith.constant 16 : i32
    %19 = vector.broadcast %c16_i32_6 : i32 to vector<16x128xi32>
    %20 = arith.cmpi slt, %18, %19 : vector<16x128xi32>
    %cst_7 = arith.constant 0.000000e+00 : f32
    %21 = vector.broadcast %cst_7 : f32 to vector<16x128xf32>
    %22 = arith.select %20, %14, %21 : vector<16x128xi1>, vector<16x128xf32>
    %cst_8 = arith.constant dense<0.000000e+00> : vector<128xf32>
    %23 = vector.multi_reduction <add>, %22, %cst_8 [0] : vector<16x128xf32> to vector<128xf32>
    %24 = vector.shape_cast %23 : vector<128xf32> to vector<1x128xf32>
    %c0_9 = arith.constant 0 : index
    %c0_10 = arith.constant 0 : index
    %25 = vector.load %arg3[%c0_9, %c0_10] : memref<16x128xf32, #tpu.memory_space<vmem>>, vector<16x128xf32>
    %c0_11 = arith.constant 0 : index
    %c0_12 = arith.constant 0 : index
    %26 = vector.load %arg4[%c0_11, %c0_12] : memref<16x128xf32, #tpu.memory_space<vmem>>, vector<16x128xf32>
    %27 = math.log %25 : vector<16x128xf32>
    %cst_13 = arith.constant -1.000000e+02 : f32
    %28 = vector.broadcast %cst_13 : f32 to vector<16x128xf32>
    %29 = arith.maximumf %27, %28 : vector<16x128xf32>
    %cst_14 = arith.constant 1.000000e+00 : f32
    %30 = vector.broadcast %cst_14 : f32 to vector<16x128xf32>
    %31 = arith.subf %30, %25 : vector<16x128xf32>
    %32 = math.log %31 : vector<16x128xf32>
    %cst_15 = arith.constant -1.000000e+02 : f32
    %33 = vector.broadcast %cst_15 : f32 to vector<16x128xf32>
    %34 = arith.maximumf %32, %33 : vector<16x128xf32>
    %35 = arith.subf %29, %34 : vector<16x128xf32>
    %36 = arith.mulf %26, %35 : vector<16x128xf32>
    %37 = arith.addf %34, %36 : vector<16x128xf32>
    %cst_16 = arith.constant 0.000000e+00 : f32
    %38 = vector.broadcast %cst_16 : f32 to vector<16x128xf32>
    %39 = arith.subf %38, %37 : vector<16x128xf32>
    %40 = tpu.iota {dimensions = array<i32: 0>} : vector<16x128xi32>
    %c16_i32_17 = arith.constant 16 : i32
    %41 = arith.muli %arg0, %c16_i32_17 : i32
    %42 = vector.broadcast %41 : i32 to vector<16x128xi32>
    %43 = arith.addi %40, %42 : vector<16x128xi32>
    %c16_i32_18 = arith.constant 16 : i32
    %44 = vector.broadcast %c16_i32_18 : i32 to vector<16x128xi32>
    %45 = arith.cmpi slt, %43, %44 : vector<16x128xi32>
    %cst_19 = arith.constant 0.000000e+00 : f32
    %46 = vector.broadcast %cst_19 : f32 to vector<16x128xf32>
    %47 = arith.select %45, %39, %46 : vector<16x128xi1>, vector<16x128xf32>
    %cst_20 = arith.constant dense<0.000000e+00> : vector<128xf32>
    %48 = vector.multi_reduction <add>, %47, %cst_20 [0] : vector<16x128xf32> to vector<128xf32>
    %49 = vector.shape_cast %48 : vector<128xf32> to vector<1x128xf32>
    %50 = tpu.concatenate %24, %49 in 0 : vector<1x128xf32>, vector<1x128xf32> -> vector<2x128xf32>
    %51 = vector.shape_cast %50 : vector<2x128xf32> to vector<1x2x128xf32>
    %c0_21 = arith.constant 0 : index
    %c0_22 = arith.constant 0 : index
    %c0_23 = arith.constant 0 : index
    %52 = vector.load %arg5[%c0_21, %c0_22, %c0_23] : memref<1x2x128xf32, #tpu.memory_space<vmem>>, vector<1x2x128xf32>
    tpu.vector_store %arg5[%c0_21, %c0_22, %c0_23], %51 {strides = array<i32>} : memref<1x2x128xf32, #tpu.memory_space<vmem>>, vector<1x2x128xf32>,
    return
  }
  func.func @transform_0(%arg0: i32) -> (i32, i32) {
    %c0_i32 = arith.constant 0 : i32
    %c0_i32_0 = arith.constant 0 : i32
    return %arg0, %c0_i32 : i32, i32
  }
  func.func @transform_1(%arg0: i32) -> (i32, i32) {
    %c0_i32 = arith.constant 0 : i32
    %c0_i32_0 = arith.constant 0 : i32
    return %arg0, %c0_i32 : i32, i32
  }
  func.func @transform_2(%arg0: i32) -> (i32, i32) {
    %c0_i32 = arith.constant 0 : i32
    %c0_i32_0 = arith.constant 0 : i32
    return %arg0, %c0_i32 : i32, i32
  }
  func.func @transform_3(%arg0: i32) -> (i32, i32) {
    %c0_i32 = arith.constant 0 : i32
    %c0_i32_0 = arith.constant 0 : i32
    return %arg0, %c0_i32 : i32, i32
  }
  func.func @transform_4(%arg0: i32) -> (i32, i32, i32) {
    %c0_i32 = arith.constant 0 : i32
    %c0_i32_0 = arith.constant 0 : i32
    %c0_i32_1 = arith.constant 0 : i32
    return %arg0, %c0_i32, %c0_i32_0 : i32, i32, i32
  }
}

</mosaic_0001>

<bundles_post_ra>
// kernel: bce_loss_2d.1
= control target key start
LH: loop header
LB: loop body
LE: loop exit
PB: predicated region body
PF: predicated region fallthrough
CT: control target
= control target key end

     0   :  { %vm96_vm0 = vcmask 1040384   ;;  %s171_s0 = inlined_call_operand.vmem [shape: f32[16,128], index: 0, kind: input, shape index: {}]   ;;  %s172_s2 = inlined_call_operand.vmem [shape: f32[16,128], index: 2, kind: input, shape index: {}]   ;;  %s173_s1 = inlined_call_operand.vmem [shape: f32[16,128], index: 1, kind: input, shape index: {}]   ;;  %s174_s3 = inlined_call_operand.vmem [shape: f32[16,128], index: 3, kind: input, shape index: {}]   ;;  %s175_s4 = inlined_call_operand.vmem [shape: f32[1,2,128], index: 4, kind: output, shape index: {}]  }
   0x1   :  { %v17_v0 = vld [vmem:[%s171_s0] sm:$0xff]  ;;  %v18_v1 = vld [vmem:[%s171_s0 + $0x8] sm:$0xff] }
   0x2   :  { %103 = vlog2.f32 %v17_v0  ;;  %v27_v2 = vsub.f32 1.0, %v17_v0  ;;  %v28_v3 = vsub.f32 1.0, %v18_v1  ;;  %v61_v4 = vld [vmem:[%s172_s2] sm:$0xff]  ;;  %v62_v5 = vld [vmem:[%s172_s2 + $0x8] sm:$0xff] }
   0x3   :  { %105 = vlog2.f32 %v18_v1  ;;  %v71_v6 = vsub.f32 1.0, %v61_v4  ;;  %v72_v7 = vsub.f32 1.0, %v62_v5  ;;  %v19_v23 = vld [vmem:[%s173_s1] sm:$0xff]  ;;  %v20_v27 = vld [vmem:[%s173_s1 + $0x8] sm:$0xff] }
   0x4   :  { %107 = vlog2.f32 %v27_v2  ;;  %v63_v37 = vld [vmem:[%s174_s3] sm:$0xff]  ;;  %v64_v40 = vld [vmem:[%s174_s3 + $0x8] sm:$0xff] }
   0x5   :  { %109 = vlog2.f32 %v28_v3 }
   0x6   :  { %111 = vlog2.f32 %v61_v4 }
   0x7   :  { %113 = vlog2.f32 %v62_v5 }
   0x8   :  { %115 = vlog2.f32 %v71_v6 }
   0x9   :  { %117 = vlog2.f32 %v72_v7 }
   0xc   :  { %v104_v8 = vpop.eup %103 }
   0xd   :  { %v106_v9 = vpop.eup %105  ;;  %v22_v10 = vmul.f32 0.6931472, %v104_v8 }
   0xe   :  { %v108_v11 = vpop.eup %107  ;;  %v24_v12 = vmul.f32 0.6931472, %v106_v9 }
   0xf   :  { %v110_v13 = vpop.eup %109  ;;  %v25_v14 = vmax.f32 %v22_v10, -100.0  ;;  %v30_v15 = vmul.f32 0.6931472, %v108_v11 }
  0x10   :  { %v112_v16 = vpop.eup %111  ;;  %v26_v17 = vmax.f32 %v24_v12, -100.0  ;;  %v32_v18 = vmul.f32 0.6931472, %v110_v13 }
  0x11   :  { %v114_v19 = vpop.eup %113  ;;  %v33_v20 = vmax.f32 %v30_v15, -100.0  ;;  %v66_v21 = vmul.f32 0.6931472, %v112_v16 }
  0x12   :  { %v116_v22 = vpop.eup %115  ;;  %v34_v24 = vmax.f32 %v32_v18, -100.0  ;;  %v68_v25 = vmul.f32 0.6931472, %v114_v19 }
  0x13   :  { %v118_v26 = vpop.eup %117  ;;  %v35_v28 = vsub.f32 %v25_v14, %v33_v20  ;;  %v69_v29 = vmax.f32 %v66_v21, -100.0  ;;  %v74_v30 = vmul.f32 0.6931472, %v116_v22 }
  0x14   :  { %v36_v31 = vsub.f32 %v26_v17, %v34_v24  ;;  %v70_v32 = vmax.f32 %v68_v25, -100.0  ;;  %v76_v33 = vmul.f32 0.6931472, %v118_v26 }
  0x15   :  { %v37_v34 = vmul.f32 %v35_v28, %v19_v23  ;;  %v77_v35 = vmax.f32 %v74_v30, -100.0 }
  0x16   :  { %v38_v36 = vmul.f32 %v36_v31, %v20_v27  ;;  %v78_v38 = vmax.f32 %v76_v33, -100.0 }
  0x17   :  { %v39_v39 = vadd.f32 %v37_v34, %v33_v20  ;;  %v79_v41 = vsub.f32 %v69_v29, %v77_v35 }
  0x18   :  { %v40_v42 = vadd.f32 %v38_v36, %v34_v24  ;;  %v80_v43 = vsub.f32 %v70_v32, %v78_v38 }
  0x19   :  { %v41_v44 = vsub.f32 0.0, %v39_v39  ;;  %v81_v45 = vmul.f32 %v79_v41, %v63_v37 }
  0x1a   :  { %v42_v46 = vsub.f32 0.0, %v40_v42  ;;  %v82_v47 = vmul.f32 %v80_v43, %v64_v40 }
  0x1b   :  { %v83_v48 = vadd.f32 %v81_v45, %v77_v35 }
  0x1c   :  { %v54_v49 = vadd.f32 %v42_v46, %v41_v44  ;;  %v84_v50 = vadd.f32 %v82_v47, %v78_v38 }
  0x1d   :  { %v85_v51 = vsub.f32 0.0, %v83_v48 }
  0x1e   :  { %v55_v52 = vrot.slane %v54_v49, 4  ;;  %v86_v53 = vsub.f32 0.0, %v84_v50 }
  0x20   :  { %v56_v54 = vadd.f32 %v55_v52, %v54_v49  ;;  %v89_v55 = vadd.f32 %v86_v53, %v85_v51 }
  0x22   :  { %v57_v56 = vrot.slane %v56_v54, 2  ;;  %v90_v57 = vrot.slane %v89_v55, 4 }
  0x24   :  { %v58_v58 = vadd.f32 %v57_v56, %v56_v54  ;;  %v91_v59 = vadd.f32 %v90_v57, %v89_v55 }
  0x26   :  { %v59_v60 = vrot.slane %v58_v58, 1  ;;  %v92_v61 = vrot.slane %v91_v59, 2 }
  0x28   :  { %v93_v62 = vadd.f32 %v92_v61, %v91_v59  ;;  %v60_v63 = vadd.f32 %v59_v60, %v58_v58 }
  0x2a   :  { %v94_v0 = vrot.slane %v93_v62, 1 }
  0x2c   :  { %v95_v1 = vadd.f32 %v94_v0, %v93_v62 }
  0x2e   :  { %v97_v2 = vsel %vm96_vm0, %v60_v63, %v95_v1 }
  0x2f   :  { %98 = vst [vmem:[%s175_s4] sm:$0x3] %v97_v2 }

</bundles_post_ra>
